<compile_context>
chip_gen: v5e
topology: v5e:2x2
jax: 0.10.0
libtpu: 0.0.40
codegen_flags: <defaults>
</compile_context>

<pallas_src>
import jax
import jax.numpy as jnp
from jax import lax
from jax.experimental import pallas as pl
from jax.experimental.pallas import tpu as pltpu

LN_EPS = 1e-5


def _pick_tile_size(seq_len, max_tile=256):
    """Largest power-of-two tile (>= 8) that divides the sequence length."""
    ts = max_tile
    while ts >= 8:
        if seq_len % ts == 0:
            return ts
        ts //= 2
    return seq_len  # fallback for odd tiny sequences


def _make_kernel(seq_len, tile, n_tiles):
    S, TS, NT = seq_len, tile, n_tiles

    def kernel(ids_ref, tok_hbm, pos_ref, gamma_ref, beta_ref, out_ref,
               tok_buf, gather_sem):
        # ids_ref:   SMEM [B*S] int32 (scalar prefetch)
        # tok_hbm:   HBM  [V, D] token-embedding table (manual gather)
        # pos_ref:   VMEM [TS, D] position rows for this tile
        # gamma/beta_ref: VMEM [1, D] LayerNorm affine params (resident)
        # out_ref:   VMEM [1, TS, D]
        # tok_buf:   VMEM [2, TS, D] double-buffered gather scratch
        # gather_sem: DMA semaphores, one per slot
        b = pl.program_id(0)
        t = pl.program_id(1)
        slot = t % 2

        def issue_tile(tile_idx, buf_slot):
            base = b * S + tile_idx * TS

            def body(i, carry):
                row = ids_ref[base + i]
                pltpu.make_async_copy(
                    tok_hbm.at[pl.ds(row, 1), :],
                    tok_buf.at[buf_slot, pl.ds(i, 1), :],
                    gather_sem.at[buf_slot],
                ).start()
                return carry

            lax.fori_loop(0, TS, body, 0)

        def wait_tile(buf_slot):
            def body(i, carry):
                pltpu.make_async_copy(
                    tok_hbm.at[pl.ds(0, 1), :],
                    tok_buf.at[buf_slot, pl.ds(i, 1), :],
                    gather_sem.at[buf_slot],
                ).wait()
                return carry

            lax.fori_loop(0, TS, body, 0)

        # Prime slot 0 with the first tile of this batch row.
        @pl.when(t == 0)
        def _():
            issue_tile(0, 0)

        # Wait for the rows of the current tile.
        wait_tile(slot)

        # Prefetch the next tile of this batch row into the other slot; its DMAs
        # overlap this tile's LayerNorm compute and output writeback.
        @pl.when(t + 1 < NT)
        def _():
            issue_tile(t + 1, 1 - slot)

        x = tok_buf[slot].astype(jnp.float32) + pos_ref[...].astype(jnp.float32)
        mean = jnp.mean(x, axis=-1, keepdims=True)
        xc = x - mean
        var = jnp.mean(xc * xc, axis=-1, keepdims=True)      # biased (torch LayerNorm)
        inv = lax.rsqrt(var + LN_EPS)
        y = xc * inv * gamma_ref[...].astype(jnp.float32) + beta_ref[...].astype(jnp.float32)
        out_ref[...] = y[None].astype(out_ref.dtype)

    return kernel


def camembert_embedding(input_ids, tok_table, pos_table, gamma, beta,
                        *, tile=None, out_dtype=jnp.float32):
    """Pallas implementation of CamemBERTEmbedding.forward (eval mode)."""
    B, S = input_ids.shape
    V, D = tok_table.shape
    max_len = pos_table.shape[0]
    assert S <= max_len, "sequence length exceeds position-embedding table"

    if tile is None:
        tile = _pick_tile_size(S)
    assert S % tile == 0, "tile size must divide the sequence length"
    NT = S // tile

    ids_flat = input_ids.reshape(-1).astype(jnp.int32)   # 1-D SMEM (tight padding)
    gamma2d = gamma.reshape(1, D)
    beta2d = beta.reshape(1, D)

    kernel = _make_kernel(S, tile, NT)

    grid_spec = pltpu.PrefetchScalarGridSpec(
        num_scalar_prefetch=1,          # flattened input_ids -> SMEM
        grid=(B, NT),
        in_specs=[
            pl.BlockSpec(memory_space=pl.ANY),                    # token table in HBM
            pl.BlockSpec((tile, D), lambda b, t, ids: (t, 0)),    # position rows
            pl.BlockSpec((1, D), lambda b, t, ids: (0, 0)),       # gamma (resident)
            pl.BlockSpec((1, D), lambda b, t, ids: (0, 0)),       # beta (resident)
        ],
        out_specs=pl.BlockSpec((1, tile, D), lambda b, t, ids: (b, t, 0)),
        scratch_shapes=[
            pltpu.VMEM((2, tile, D), tok_table.dtype),            # double-buffered gather
            pltpu.SemaphoreType.DMA((2,)),
        ],
    )

    itemsize_out = jnp.dtype(out_dtype).itemsize
    cost = pl.CostEstimate(
        flops=8 * B * S * D,
        transcendentals=B * S,
        bytes_accessed=(B * S * D * tok_table.dtype.itemsize      # gathered token rows
                        + B * S * D * pos_table.dtype.itemsize    # position rows
                        + B * S * D * itemsize_out),              # output writeback
    )

    return pl.pallas_call(
        kernel,
        out_shape=jax.ShapeDtypeStruct((B, S, D), out_dtype),
        grid_spec=grid_spec,
        compiler_params=pltpu.CompilerParams(
            # batch axis parallel (v7x megacore); sequence-tile axis kept
            # "arbitrary" so the per-batch-row prime/prefetch ordering is preserved.
            dimension_semantics=("parallel", "arbitrary")),
        cost_estimate=cost,
    )(ids_flat, tok_table, pos_table, gamma2d, beta2d)


def _reference(input_ids, tok_table, pos_table, gamma, beta):
    B, S = input_ids.shape
    tok = tok_table[input_ids]                       # (B, S, D)
    pos = pos_table[jnp.arange(S)][None]             # (1, S, D)
    x = tok + pos
    mean = jnp.mean(x, axis=-1, keepdims=True)
    var = jnp.mean((x - mean) ** 2, axis=-1, keepdims=True)
    return (x - mean) / jnp.sqrt(var + LN_EPS) * gamma + beta


if __name__ == "__main__":
    # Small, module-consistent shapes (lane-aligned D).
    vocab_size = 64
    max_len = 16
    embed_dim = 128
    batch = 2
    seq = 16

    key = jax.random.PRNGKey(0)
    k_tok, k_pos, k_ids = jax.random.split(key, 3)

    # nn.Embedding default init: N(0, 1); nn.LayerNorm default: gamma=1, beta=0.
    tok_table = jax.random.normal(k_tok, (vocab_size, embed_dim), dtype=jnp.float32)
    pos_table = jax.random.normal(k_pos, (max_len, embed_dim), dtype=jnp.float32)
    gamma = jnp.ones((embed_dim,), dtype=jnp.float32)
    beta = jnp.zeros((embed_dim,), dtype=jnp.float32)

    input_ids = jax.random.randint(k_ids, (batch, seq), 0, vocab_size, dtype=jnp.int32)

    ref = _reference(input_ids, tok_table, pos_table, gamma, beta)

    # Default tile (whole sequence in one tile here).
    out = camembert_embedding(input_ids, tok_table, pos_table, gamma, beta)
    out = jax.block_until_ready(out)
    assert out.shape == (batch, seq, embed_dim)
    assert jnp.allclose(out, ref, atol=1e-5, rtol=1e-5), "mismatch vs JAX reference"

    # Smaller tile to exercise the double-buffered gather prefetch path (NT > 1).
    out2 = camembert_embedding(input_ids, tok_table, pos_table, gamma, beta, tile=8)
    out2 = jax.block_until_ready(out2)
    assert jnp.allclose(out2, ref, atol=1e-5, rtol=1e-5), "mismatch vs JAX reference (tiled)"

    print("KERNEL_OK")
</pallas_src>

<mosaic_0001>
module attributes {stable_mosaic.version = 11 : i64} {
  func.func @kernel(%arg0: i32, %arg1: i32, %arg2: memref<32xi32, #tpu.memory_space<smem>>, %arg3: memref<64x128xf32, #tpu.memory_space<any>>, %arg4: memref<16x128xf32, #tpu.memory_space<vmem>>, %arg5: memref<1x128xf32, #tpu.memory_space<vmem>>, %arg6: memref<1x128xf32, #tpu.memory_space<vmem>>, %arg7: memref<1x16x128xf32, #tpu.memory_space<vmem>>, %arg8: memref<2x16x128xf32, #tpu.memory_space<vmem>>, %arg9: memref<2x!tpu.dma_semaphore, #tpu.memory_space<semaphore_mem>>) attributes {dimension_semantics = [#tpu.dimension_semantics<parallel>, #tpu.dimension_semantics<arbitrary>], iteration_bounds = array<i64: 2, 1>, scalar_prefetch = 1 : i64, scratch_operands = 2 : i64, tpu.core_type = #tpu.core_type<tc>, window_params = [{}, {transform_indices = @transform_1, window_bounds = array<i64: 16, 128>}, {pipeline_mode = #tpu.pipeline_mode<synchronous>, transform_indices = @transform_2, window_bounds = array<i64: 1, 128>}, {pipeline_mode = #tpu.pipeline_mode<synchronous>, transform_indices = @transform_3, window_bounds = array<i64: 1, 128>}, {transform_indices = @transform_4, window_bounds = array<i64: 1, 16, 128>}]} {
    %c2_i32 = arith.constant 2 : i32
    %c0_i32 = arith.constant 0 : i32
    %0 = arith.cmpi eq, %c2_i32, %c0_i32 : i32
    %c1_i32 = arith.constant 1 : i32
    %1 = arith.select %0, %c1_i32, %c2_i32 : i32
    %2 = arith.remsi %arg1, %1 : i32
    %c0_i32_0 = arith.constant 0 : i32
    %3 = arith.cmpi ne, %2, %c0_i32_0 : i32
    %c0_i32_1 = arith.constant 0 : i32
    %4 = arith.cmpi slt, %2, %c0_i32_1 : i32
    %c0_i32_2 = arith.constant 0 : i32
    %5 = arith.cmpi slt, %1, %c0_i32_2 : i32
    %6 = arith.xori %4, %5 : i1
    %7 = arith.andi %6, %3 : i1
    %8 = arith.addi %2, %1 : i32
    %9 = arith.select %7, %8, %2 : i32
    %c0_i32_3 = arith.constant 0 : i32
    %10 = arith.cmpi eq, %arg1, %c0_i32_3 : i32
    %11 = arith.extui %10 : i1 to i32
    %c0_i32_4 = arith.constant 0 : i32
    %12 = arith.cmpi ne, %11, %c0_i32_4 : i32
    scf.if %12 {
      %c16_i32_25 = arith.constant 16 : i32
      %47 = arith.muli %arg0, %c16_i32_25 : i32
      %c0_i32_26 = arith.constant 0 : i32
      %48 = arith.addi %47, %c0_i32_26 : i32
      %c0_i32_27 = arith.constant 0 : i32
      %c16_i32_28 = arith.constant 16 : i32
      %49 = arith.addi %c0_i32_27, %c16_i32_28 : i32
      %c1_i32_29 = arith.constant 1 : i32
      scf.for %arg10 = %c0_i32_27 to %49 step %c1_i32_29  : i32 {
        %50 = arith.addi %48, %arg10 : i32
        %51 = arith.index_cast %50 : i32 to index
        %52 = memref.load %arg2[%51] : memref<32xi32, #tpu.memory_space<smem>>
        %c0_i32_31 = arith.constant 0 : i32
        %c0_i32_32 = arith.constant 0 : i32
        %c0_i32_33 = arith.constant 0 : i32
        %53 = tpu.memref_slice %arg3[%52, %c0_i32_33] : memref<64x128xf32, #tpu.memory_space<any>> -> memref<1x128xf32, #tpu.memory_space<any>>
        %c0_i32_34 = arith.constant 0 : i32
        %54 = tpu.memref_slice %arg8[%c0_i32_31, %arg10, %c0_i32_34] : memref<2x16x128xf32, #tpu.memory_space<vmem>> -> memref<1x1x128xf32, #tpu.memory_space<vmem>>
        %55 = tpu.memref_squeeze %54 : memref<1x1x128xf32, #tpu.memory_space<vmem>> -> memref<1x128xf32, #tpu.memory_space<vmem>>
        %56 = tpu.memref_slice %arg9[%c0_i32_32] : memref<2x!tpu.dma_semaphore, #tpu.memory_space<semaphore_mem>> -> memref<1x!tpu.dma_semaphore, #tpu.memory_space<semaphore_mem>>
        %57 = tpu.memref_squeeze %56 : memref<1x!tpu.dma_semaphore, #tpu.memory_space<semaphore_mem>> -> memref<!tpu.dma_semaphore, #tpu.memory_space<semaphore_mem>>
        tpu.enqueue_dma source(%53 : memref<1x128xf32, #tpu.memory_space<any>>) target(%55 : memref<1x128xf32, #tpu.memory_space<vmem>>) target_semaphore(%57 : memref<!tpu.dma_semaphore, #tpu.memory_space<semaphore_mem>>)
      }
      %c16_i32_30 = arith.constant 16 : i32
    } else {
    }
    %c0_i32_5 = arith.constant 0 : i32
    %c16_i32 = arith.constant 16 : i32
    %13 = arith.addi %c0_i32_5, %c16_i32 : i32
    %c1_i32_6 = arith.constant 1 : i32
    scf.for %arg10 = %c0_i32_5 to %13 step %c1_i32_6  : i32 {
      %c0_i32_25 = arith.constant 0 : i32
      %c0_i32_26 = arith.constant 0 : i32
      %47 = tpu.memref_slice %arg3[%c0_i32_25, %c0_i32_26] : memref<64x128xf32, #tpu.memory_space<any>> -> memref<1x128xf32, #tpu.memory_space<any>>
      %c0_i32_27 = arith.constant 0 : i32
      %48 = tpu.memref_slice %arg8[%9, %arg10, %c0_i32_27] : memref<2x16x128xf32, #tpu.memory_space<vmem>> -> memref<1x1x128xf32, #tpu.memory_space<vmem>>
      %49 = tpu.memref_squeeze %48 : memref<1x1x128xf32, #tpu.memory_space<vmem>> -> memref<1x128xf32, #tpu.memory_space<vmem>>
      %50 = tpu.memref_slice %arg9[%9] : memref<2x!tpu.dma_semaphore, #tpu.memory_space<semaphore_mem>> -> memref<1x!tpu.dma_semaphore, #tpu.memory_space<semaphore_mem>>
      %51 = tpu.memref_squeeze %50 : memref<1x!tpu.dma_semaphore, #tpu.memory_space<semaphore_mem>> -> memref<!tpu.dma_semaphore, #tpu.memory_space<semaphore_mem>>
      tpu.wait_dma2 semaphore(%51 : memref<!tpu.dma_semaphore, #tpu.memory_space<semaphore_mem>>) src(%47 : memref<1x128xf32, #tpu.memory_space<any>>) dst(%49 : memref<1x128xf32, #tpu.memory_space<vmem>>)
    }
    %c16_i32_7 = arith.constant 16 : i32
    %c1_i32_8 = arith.constant 1 : i32
    %14 = arith.addi %arg1, %c1_i32_8 : i32
    %c1_i32_9 = arith.constant 1 : i32
    %15 = arith.cmpi slt, %14, %c1_i32_9 : i32
    %16 = arith.extui %15 : i1 to i32
    %c0_i32_10 = arith.constant 0 : i32
    %17 = arith.cmpi ne, %16, %c0_i32_10 : i32
    scf.if %17 {
      %c1_i32_25 = arith.constant 1 : i32
      %47 = arith.addi %arg1, %c1_i32_25 : i32
      %c1_i32_26 = arith.constant 1 : i32
      %48 = arith.subi %c1_i32_26, %9 : i32
      %c16_i32_27 = arith.constant 16 : i32
      %49 = arith.muli %arg0, %c16_i32_27 : i32
      %c16_i32_28 = arith.constant 16 : i32
      %50 = arith.muli %47, %c16_i32_28 : i32
      %51 = arith.addi %49, %50 : i32
      %c0_i32_29 = arith.constant 0 : i32
      %c16_i32_30 = arith.constant 16 : i32
      %52 = arith.addi %c0_i32_29, %c16_i32_30 : i32
      %c1_i32_31 = arith.constant 1 : i32
      scf.for %arg10 = %c0_i32_29 to %52 step %c1_i32_31  : i32 {
        %53 = arith.addi %51, %arg10 : i32
        %54 = arith.index_cast %53 : i32 to index
        %55 = memref.load %arg2[%54] : memref<32xi32, #tpu.memory_space<smem>>
        %c0_i32_33 = arith.constant 0 : i32
        %56 = tpu.memref_slice %arg3[%55, %c0_i32_33] : memref<64x128xf32, #tpu.memory_space<any>> -> memref<1x128xf32, #tpu.memory_space<any>>
        %c0_i32_34 = arith.constant 0 : i32
        %57 = tpu.memref_slice %arg8[%48, %arg10, %c0_i32_34] : memref<2x16x128xf32, #tpu.memory_space<vmem>> -> memref<1x1x128xf32, #tpu.memory_space<vmem>>
        %58 = tpu.memref_squeeze %57 : memref<1x1x128xf32, #tpu.memory_space<vmem>> -> memref<1x128xf32, #tpu.memory_space<vmem>>
        %59 = tpu.memref_slice %arg9[%48] : memref<2x!tpu.dma_semaphore, #tpu.memory_space<semaphore_mem>> -> memref<1x!tpu.dma_semaphore, #tpu.memory_space<semaphore_mem>>
        %60 = tpu.memref_squeeze %59 : memref<1x!tpu.dma_semaphore, #tpu.memory_space<semaphore_mem>> -> memref<!tpu.dma_semaphore, #tpu.memory_space<semaphore_mem>>
        tpu.enqueue_dma source(%56 : memref<1x128xf32, #tpu.memory_space<any>>) target(%58 : memref<1x128xf32, #tpu.memory_space<vmem>>) target_semaphore(%60 : memref<!tpu.dma_semaphore, #tpu.memory_space<semaphore_mem>>)
      }
      %c16_i32_32 = arith.constant 16 : i32
    } else {
    }
    %18 = arith.index_cast %9 : i32 to index
    %c0 = arith.constant 0 : index
    %c0_11 = arith.constant 0 : index
    %19 = vector.load %arg8[%18, %c0, %c0_11] : memref<2x16x128xf32, #tpu.memory_space<vmem>>, vector<1x16x128xf32>
    %20 = vector.shape_cast %19 : vector<1x16x128xf32> to vector<16x128xf32>
    %c0_12 = arith.constant 0 : index
    %c0_13 = arith.constant 0 : index
    %21 = vector.load %arg4[%c0_12, %c0_13] : memref<16x128xf32, #tpu.memory_space<vmem>>, vector<16x128xf32>
    %22 = arith.addf %20, %21 : vector<16x128xf32>
    %cst = arith.constant dense<0.000000e+00> : vector<16xf32>
    %23 = vector.multi_reduction <add>, %22, %cst [1] : vector<16x128xf32> to vector<16xf32>
    %24 = vector.shape_cast %23 : vector<16xf32> to vector<16x1xf32>
    %cst_14 = arith.constant 1.280000e+02 : f32
    %25 = vector.broadcast %cst_14 : f32 to vector<16x1xf32>
    %26 = arith.divf %24, %25 : vector<16x1xf32>
    %27 = vector.broadcast %26 : vector<16x1xf32> to vector<16x128xf32>
    %28 = arith.subf %22, %27 : vector<16x128xf32>
    %29 = arith.mulf %28, %28 : vector<16x128xf32>
    %cst_15 = arith.constant dense<0.000000e+00> : vector<16xf32>
    %30 = vector.multi_reduction <add>, %29, %cst_15 [1] : vector<16x128xf32> to vector<16xf32>
    %31 = vector.shape_cast %30 : vector<16xf32> to vector<16x1xf32>
    %cst_16 = arith.constant 1.280000e+02 : f32
    %32 = vector.broadcast %cst_16 : f32 to vector<16x1xf32>
    %33 = arith.divf %31, %32 : vector<16x1xf32>
    %cst_17 = arith.constant 9.99999974E-6 : f32
    %34 = vector.broadcast %cst_17 : f32 to vector<16x1xf32>
    %35 = arith.addf %33, %34 : vector<16x1xf32>
    %36 = math.rsqrt %35 : vector<16x1xf32>
    %37 = vector.broadcast %36 : vector<16x1xf32> to vector<16x128xf32>
    %38 = arith.mulf %28, %37 : vector<16x128xf32>
    %c0_18 = arith.constant 0 : index
    %c0_19 = arith.constant 0 : index
    %39 = vector.load %arg5[%c0_18, %c0_19] : memref<1x128xf32, #tpu.memory_space<vmem>>, vector<1x128xf32>
    %40 = vector.broadcast %39 : vector<1x128xf32> to vector<16x128xf32>
    %41 = arith.mulf %38, %40 : vector<16x128xf32>
    %c0_20 = arith.constant 0 : index
    %c0_21 = arith.constant 0 : index
    %42 = vector.load %arg6[%c0_20, %c0_21] : memref<1x128xf32, #tpu.memory_space<vmem>>, vector<1x128xf32>
    %43 = vector.broadcast %42 : vector<1x128xf32> to vector<16x128xf32>
    %44 = arith.addf %41, %43 : vector<16x128xf32>
    %45 = vector.shape_cast %44 : vector<16x128xf32> to vector<1x16x128xf32>
    %c0_22 = arith.constant 0 : index
    %c0_23 = arith.constant 0 : index
    %c0_24 = arith.constant 0 : index
    %46 = vector.load %arg7[%c0_22, %c0_23, %c0_24] : memref<1x16x128xf32, #tpu.memory_space<vmem>>, vector<1x16x128xf32>
    tpu.vector_store %arg7[%c0_22, %c0_23, %c0_24], %45 {strides = array<i32>} : memref<1x16x128xf32, #tpu.memory_space<vmem>>, vector<1x16x128xf32>,
    return
  }
  func.func @transform_1(%arg0: i32, %arg1: i32, %arg2: memref<32xi32, #tpu.memory_space<smem>>) -> (i32, i32) {
    %c0_i32 = arith.constant 0 : i32
    %c0_i32_0 = arith.constant 0 : i32
    return %arg1, %c0_i32 : i32, i32
  }
  func.func @transform_2(%arg0: i32, %arg1: i32, %arg2: memref<32xi32, #tpu.memory_space<smem>>) -> (i32, i32) {
    %c0_i32 = arith.constant 0 : i32
    %c0_i32_0 = arith.constant 0 : i32
    %c0_i32_1 = arith.constant 0 : i32
    return %c0_i32, %c0_i32_0 : i32, i32
  }
  func.func @transform_3(%arg0: i32, %arg1: i32, %arg2: memref<32xi32, #tpu.memory_space<smem>>) -> (i32, i32) {
    %c0_i32 = arith.constant 0 : i32
    %c0_i32_0 = arith.constant 0 : i32
    %c0_i32_1 = arith.constant 0 : i32
    return %c0_i32, %c0_i32_0 : i32, i32
  }
  func.func @transform_4(%arg0: i32, %arg1: i32, %arg2: memref<32xi32, #tpu.memory_space<smem>>) -> (i32, i32, i32) {
    %c0_i32 = arith.constant 0 : i32
    %c0_i32_0 = arith.constant 0 : i32
    return %arg0, %arg1, %c0_i32 : i32, i32, i32
  }
}

</mosaic_0001>

<bundles_post_ra>
// kernel: tpu_custom_call.1
= control target key start
LH: loop header
LB: loop body
LE: loop exit
PB: predicated region body
PF: predicated region fallthrough
CT: control target
= control target key end

     0   :  { %s771_s21 = smov [#allocation5]   ;;  %s945_s0 = inlined_call_operand.hbm [shape: s32[32], index: 0, kind: input, shape index: {}]   ;;  %s946_s1 = inlined_call_operand.hbm [shape: f32[64,128], index: 1, kind: input, shape index: {}]   ;;  %s947_s2 = inlined_call_operand.hbm [shape: f32[16,128], index: 2, kind: input, shape index: {}]   ;;  %s948_s3 = inlined_call_operand.vmem [shape: f32[1,128], index: 3, kind: input, shape index: {}]   ;;  %s949_s4 = inlined_call_operand.vmem [shape: f32[1,128], index: 4, kind: input, shape index: {}]   ;;  %s950_s5 = inlined_call_operand.hbm [shape: f32[2,16,128], index: 5, kind: output, shape index: {}]  }
   0x1   :  { %952 = sst [smem:[#allocation20_spill]] %s947_s2  ;;  %s11_s20 = sshll.u32 %s945_s0, 4  ;;  %s12_s20 = int_to_ptr.hbm [resolvable:$true] %s11_s20 }
   0x2   :  { %14 = dma.hbm_to_smem %s12_s20, 16, %s771_s21, [#allocation4] }
   0x3   :  { %727 = dma.done.wait [#allocation4], 16 }
   0x4   :  { %728 = vsyncadd [#allocation4], 4294967280 }
   0x5   :  { %17 = sfence }
   0x6   :  { %18 = vsyncpa [#allocation7], 0 }
   0x7   :  { %19 = vsyncpa [#allocation8], 0 }
   0x8   :  { %21 = vsyncpa [#allocation8 + $0x1], 0  ;;  %s812_s22 = smov 0   ;;  %s814_s23 = smov 0  }
   0x9   :  { %s816_s24 = smov 0   ;;  %s818_s25 = smov 0  }
   0xa   :  { %s820_s26 = smov 0   ;;  %s822_s0 = smov 0  }
   0xb LB: > { %s485_s27 = sadd.s32 4294967295, %s761_s0   ;;  %s486_s28 = sadd.s32 4294967294, %s761_s0   ;;  %s761_s0 = sphi %s822_s0, %s27_s0   ;;  %s757_s26 = sphi %s820_s26, %s963_s26   ;;  %s753_s25 = sphi %s818_s25, %s962_s25   ;;  %s749_s24 = sphi %s816_s24, %s961_s24   ;;  %s745_s23 = sphi %s814_s23, %s960_s23   ;;  %s741_s22 = sphi %s812_s22, %s959_s22  }
   0xc   : > { %s39_s29 = sadd.s32 1, %s757_s26  ;;  %s116_s30 = sadd.s32 1, %s749_s24 }
   0xd   : > { %p41_p0 = scmp.ge.s32.totalorder %s39_s29, 2  ;;  %p126_p1 = scmp.ne.s32.totalorder %s749_s24, %s745_s23 }
   0xe   : > { %p127_p2 = scmp.eq.s32.totalorder %s485_s27, 1  ;;  %p132_p3 = scmp.ne.s32.totalorder %s745_s23, %s741_s22 }
   0xf   : > { %s965_s29 = smov (%p41_p0, %s39_s29), 0  ;;  %p133_p5 = scmp.eq.s32.totalorder %s486_s28, 1 }
  0x10   : > { %p852_p4 = por %p127_p2, %p126_p1  ;;  %s111_s7 = ssub.s32 %s757_s26, %s965_s29 }
  0x11   : > { %p487_p6 = scmp.ge.s32.totalorder %s761_s0, 1  ;;  %p114_p7 = scmp.eq.s32.totalorder %s111_s7, 0 }
  0x12   : > { %p859_p8 = por %p133_p5, %p132_p3  ;;  %p140_p9 = scmp.lt.s32.totalorder %s761_s0, 3 }
  0x13   : > { %s865_s9 = scalar_select %p114_p7, %s749_s24, %s116_s30  }
  0x14   : > { %p141_p10 = pnand %p487_p6, %p140_p9  ;;  %p519_p11 = scmp.eq.s32.totalorder %s485_s27, 0 }
  0x15   : > { %s955_s2 = sld [smem:[#allocation20_spill]]  ;;  %s772_s13 = smov [#allocation6]  }
  0x16   : > { %p511_p12 = pneg %p141_p10  ;;  %s156_s14 = sshll.u32 %s772_s13, 4  ;;  %s157_s14 = int_to_ptr.vmem [resolvable:$true] %s156_s14 }
  0x17   : > { %s773_s15 = smov 128   ;;  %s774_s16 = smov 8  }
  0x18   : > { %p512_p13 = pnand %p519_p11, %p511_p12  ;;  %178 = sbr.rel (%p141_p10) target bundleno = 356 (0x164), region = 32 }
  0x1b   : > { %s154_s12 = sshll.u32 %s955_s2, 4  ;;  %s155_s12 = int_to_ptr.hbm [resolvable:$true] %s154_s12 }
  0x1c   : > { %514 = dma.hbm_to_vmem [thread:$0]  (!%p512_p13), %s155_s12, 256, %s157_s14, [#allocation7], %s773_s15, %s773_s15, %s774_s16  }
  0x1d   : > { %730 = dma.done.wait (%p519_p11), [#allocation7], 256  }
  0x1e   : > { %732 = vsyncadd (%p519_p11), [#allocation7], 4294967040  ;;  %s951_s17 = sand.u32 1, %s745_s23   ;;  %s876_s21 = smov 0  }
  0x1f   : > { %s491_s19 = sshll.u32 %s951_s17, 4 }
  0x20   : > { %s874_s20 = scalar_lea.vmem [#allocation9], %s491_s19 }
  0x21 LB: >> { %s956_s18 = sshll.u32 %s753_s25, 4  ;;  %s226_s30 = scalar_lea.vmem [#allocation2], %s765_s21  ;;  %s765_s21 = sphi %s876_s21, %s222_s21  }
  0x22   : >> { %s223_s27 = sadd.s32 %s765_s21, %s956_s18  ;;  %s236_s7 = sshll.u32 %s226_s30, 4  ;;  %s237_s7 = int_to_ptr.vmem [resolvable:$true] %s236_s7 }
  0x23   : >> { %s224_s28 = sld [smem:[#allocation5 + %s223_s27]]  ;;  %s647_s17 = scalar_lea.hbm %s946_s1, 64 }
  0x29   : >> { %s225_s12 = scalar_lea.hbm %s946_s1, %s224_s28 }
  0x2a   : >> { %s234_s13 = sshll.u32 %s225_s12, 4  ;;  %s235_s13 = int_to_ptr.hbm [resolvable:$true] %s234_s13 }
  0x2b   : >> { %s643_s14 = sshra.s32 %s235_s13, 4  ;;  %s644_s14 = int_to_ptr.hbm [resolvable:$true] %s643_s14 }
  0x2c   : >> { %s645_s15 = scalar_lea.hbm %s644_s14, 1  ;;  %p648_p1 = scmp.lt.s32.totalorder %s644_s14, %s946_s1 }
  0x2d   : >> { %p646_p0 = scmp.ne.s32.totalorder %s644_s14, %s645_s15  ;;  %p649_p2 = scmp.lt.s32.totalorder %s647_s17, %s645_s15 }
  0x2f   : >> { %p650_p3 = por %p649_p2, %p648_p1 }
  0x31   : >> { %p651_p5 = pnand %p650_p3, %p646_p0 }
  0x33   : >> { %654 = shalt.err (!%p651_p5)  }
  0x34   : >> { %s655_s27 = sshra.s32 %s237_s7, 4  ;;  %s775_s30 = smov [#allocation2]   ;;  %s656_s27 = int_to_ptr.vmem [resolvable:$true] %s655_s27 }
  0x35   : >> { %s657_s28 = scalar_lea.vmem %s656_s27, 1  ;;  %s659_s10 = scalar_lea.vmem %s775_s30, 32 }
  0x36   : >> { %p658_p6 = scmp.ne.s32.totalorder %s656_s27, %s657_s28  ;;  %p660_p7 = scmp.lt.s32.totalorder %s656_s27, [#allocation2] }
  0x37   : >> { %p661_p9 = scmp.lt.s32.totalorder %s659_s10, %s657_s28 }
  0x39   : >> { %p662_p10 = por %p661_p9, %p660_p7 }
  0x3b   : >> { %p663_p11 = pnand %p662_p10, %p658_p6 }
  0x3d   : >> { %666 = shalt.err (!%p663_p11)  }
  0x3e   : >> { %239 = dma.hbm_to_vmem [thread:$0]  %s235_s13, 16, %s237_s7, [#allocation3] }
  0x3f   : >> { %s222_s21 = sadd.s32 1, %s765_s21  }
  0x40   : >> { %p219_p12 = scmp.ge.s32.totalorder %s222_s21, 16  }
  0x41   : > { %s767_s2 = smov (%p219_p12), 0  }
  0x42   : > { %221 = sbr.rel (!%p219_p12) target bundleno = 33 (0x21), region = 115 }
  0x47 LB: >> { %733 = dma.done.wait [#allocation3], 16  ;;  %s769_s2 = sphi %s767_s2, %s245_s2  }
  0x48   : >> { %734 = vsyncadd [#allocation3], 4294967280  ;;  %s245_s2 = sadd.s32 1, %s769_s2  }
  0x49   : >> { %p242_p13 = scmp.ge.s32.totalorder %s245_s2, 16  }
  0x4a   : > { %v287_v0 = vld [vmem:[#allocation2] sm:$0xff] (%p242_p13)  ;;  %v288_v3 = vld [vmem:[#allocation2 + $0x8] sm:$0xff] (%p242_p13)  ;;  %v776_v6 = vmov (%p242_p13), 128.0   ;;  %s957_s11 = sshll.u32 (%p242_p13), %s753_s25, 4  ;;  %s369_s15 = sshll.u32 (%p242_p13), %s874_s20, 4  ;;  %s370_s15 = int_to_ptr.vmem [resolvable:$true] %s369_s15 }
  0x4b   : > { %244 = sbr.rel (!%p242_p13) target bundleno = 71 (0x47), region = 126  ;;  %v289_v1 = vld [vmem:[#allocation6] sm:$0xff] (%p242_p13)  ;;  %v290_v4 = vld [vmem:[#allocation6 + $0x8] sm:$0xff] (%p242_p13)  ;;  %595 = vrcp.f32 (%p242_p13), %v776_v6  ;;  %s368_s14 = scalar_lea.hbm (%p242_p13), %s950_s5, %s957_s11 }
  0x4c   : > { %v291_v2 = vadd.f32 (%p242_p13), %v289_v1, %v287_v0  ;;  %v292_v5 = vadd.f32 (%p242_p13), %v290_v4, %v288_v3  ;;  %v593_v35 = vld [vmem:[%s948_s3] ss:$0 sm:$0xff] (%p242_p13)  ;;  %s371_s16 = sshll.u32 (%p242_p13), %s368_s14, 4  ;;  %s958_s19 = sand.u32 (%p242_p13), 1, %s745_s23   ;;  %s372_s16 = int_to_ptr.hbm [resolvable:$true] %s371_s16 }
  0x4d   : > { %v594_v39 = vld [vmem:[%s949_s4] ss:$0 sm:$0xff] (%p242_p13)  ;;  %s355_s27 = scalar_lea.sflag (%p242_p13), [#allocation8], %s958_s19  ;;  %s681_s28 = sshra.s32 (%p242_p13), %s372_s16, 4  ;;  %s682_s28 = int_to_ptr.hbm [resolvable:$true] %s681_s28 }
  0x4e   : > { %293 = vadd.xlane.f32.xlu0 (%p242_p13), %v291_v2  ;;  %s683_s25 = scalar_lea.hbm (%p242_p13), %s682_s28, 16  ;;  %s687_s2 = scalar_lea.hbm (%p242_p13), %s950_s5, 32 }
  0x4f   : > { %p684_p0 = scmp.ne.s32.totalorder (%p242_p13), %s682_s28, %s683_s25  ;;  %p688_p3 = scmp.lt.s32.totalorder (%p242_p13), %s682_s28, %s950_s5 }
  0x50   : > { %p689_p5 = scmp.lt.s32.totalorder %s687_s2, %s683_s25 }
  0x51   : > { %v596_v7 = vpop.eup %595  ;;  %p685_p1 = pnand %p684_p0, %p852_p4 }
  0x52   : > { %v298_v8 = vmul.f32 128.0, %v596_v7  ;;  %vm302_vm0 = vweird.f32 %v596_v7  ;;  %p690_p6 = por %p689_p5, %p688_p3 }
  0x53   : > { %p686_p2 = pneg %p685_p1 }
  0x54   : > { %v299_v9 = vsub.f32 1.0, %v298_v8 }
  0x55   : > { %p691_p7 = pnand %p690_p6, %p686_p2 }
  0x56   : > { %295 = vadd.xlane.f32.xlu0 %v292_v5  ;;  %v300_v10 = vmul.f32 %v596_v7, %v299_v9 }
  0x58   : > { %v301_v11 = vadd.f32 %v596_v7, %v300_v10 }
  0x5a   : > { %v303_v12 = vsel %vm302_vm0, %v596_v7, %v301_v11 }
  0xc1   : > { %v294_v13 = vpop.xlane.xlu0 %293 }
  0xc2   : > { %v304_v14 = vmul.f32 %v303_v12, %v294_v13 }
  0xc4   : > { %v306_v15 = vsub.f32 %v291_v2, %v304_v14 }
  0xc6   : > { %v308_v16 = vmul.f32 %v306_v15, %v306_v15 }
  0xc8   : > { %310 = vadd.xlane.f32.xlu1 %v308_v16 }
  0xc9   : > { %v296_v17 = vpop.xlane.xlu0 %295 }
  0xca   : > { %v305_v18 = vmul.f32 %v303_v12, %v296_v17 }
  0xcc   : > { %v307_v19 = vsub.f32 %v292_v5, %v305_v18 }
  0xce   : > { %v309_v20 = vmul.f32 %v307_v19, %v307_v19 }
  0xd0   : > { %312 = vadd.xlane.f32.xlu1 %v309_v20 }
 0x13b   : > { %v311_v21 = vpop.xlane.xlu1 %310 }
 0x13c   : > { %v314_v22 = vmul.f32 %v311_v21, %v303_v12 }
 0x13e   : > { %v316_v23 = vadd.f32 1e-05, %v314_v22 }
 0x140   : > { %597 = vrsqrt.f32 %v316_v23  ;;  %vm324_vm2 = vweird.f32 %v316_v23 }
 0x143   : > { %v313_v24 = vpop.xlane.xlu1 %312 }
 0x144   : > { %v315_v25 = vmul.f32 %v313_v24, %v303_v12 }
 0x146   : > { %v598_v26 = vpop.eup %597  ;;  %v317_v27 = vadd.f32 1e-05, %v315_v25 }
 0x147   : > { %v319_v28 = vmul.f32 %v598_v26, %v316_v23  ;;  %vm325_vm1 = vweird.f32 %v598_v26 }
 0x148   : > { %599 = vrsqrt.f32 %v317_v27  ;;  %vm326_vm3 = vmor %vm324_vm2, %vm325_vm1  ;;  %vm334_vm5 = vweird.f32 %v317_v27 }
 0x149   : > { %v320_v29 = vmul.f32 %v598_v26, %v319_v28 }
 0x14b   : > { %v321_v30 = vmul.f32 0.5, %v320_v29 }
 0x14d   : > { %v322_v31 = vsub.f32 1.5, %v321_v30 }
 0x14e   : > { %v600_v32 = vpop.eup %599 }
 0x14f   : > { %v323_v33 = vmul.f32 %v598_v26, %v322_v31  ;;  %v329_v34 = vmul.f32 %v600_v32, %v317_v27  ;;  %vm335_vm4 = vweird.f32 %v600_v32 }
 0x150   : > { %vm336_vm6 = vmor %vm334_vm5, %vm335_vm4 }
 0x151   : > { %v327_v36 = vsel %vm326_vm3, %v598_v26, %v323_v33  ;;  %v330_v37 = vmul.f32 %v600_v32, %v329_v34 }
 0x152   : > { %v338_v38 = vmul.f32 %v327_v36, %v306_v15 }
 0x153   : > { %v331_v40 = vmul.f32 0.5, %v330_v37 }
 0x154   : > { %v344_v41 = vmul.f32 %v593_v35, %v338_v38 }
 0x155   : > { %v332_v42 = vsub.f32 1.5, %v331_v40 }
 0x156   : > { %v350_v43 = vadd.f32 %v594_v39, %v344_v41 }
 0x157   : > { %v333_v44 = vmul.f32 %v600_v32, %v332_v42 }
 0x158   : > { %352 = vst [vmem:[%s874_s20] sm:$0xff] %v350_v43 }
 0x159   : > { %v337_v45 = vsel %vm336_vm6, %v600_v32, %v333_v44 }
 0x15a   : > { %v339_v46 = vmul.f32 %v337_v45, %v307_v19 }
 0x15c   : > { %v345_v47 = vmul.f32 %v593_v35, %v339_v46 }
 0x15e   : > { %v351_v48 = vadd.f32 %v594_v39, %v345_v47 }
 0x160   : > { %353 = vst [vmem:[%s874_s20 + $0x8] sm:$0xff] %v351_v48 }
 0x161   : > { %694 = shalt.err (!%p691_p7)
}
 0x162   : > { %s777_s20 = smov 128   ;;  %s778_s21 = smov 8  }
 0x163   : > { %509 = dma.vmem_to_hbm [thread:$0]  (%p852_p4), %s370_s15, 256, %s372_s16, %s355_s27, %s777_s20, %s777_s20, %s778_s21  }
 0x164 PF: > { %p521_p9 = scmp.ge.s32.totalorder %s761_s0, 2  ;;  %s386_s7 = sand.u32 1, %s741_s22  }
 0x165   : > { %s387_s11 = scalar_lea.sflag [#allocation8], %s386_s7 }
 0x166   : > { %p516_p10 = pnand %p521_p9, %p859_p8 }
 0x168   : > { %p517_p11 = pneg %p516_p10 }
 0x16a   : > { %736 = dma.done.wait (%p517_p11), %s387_s11, 256  }
 0x16b   : > { %738 = vsyncadd (%p517_p11), %s387_s11, 4294967040  ;;  %s27_s0 = sadd.s32 1, %s761_s0   ;;  %s959_s22 = smov %s745_s23 }
 0x16c   : > { %p24_p12 = scmp.ge.s32.totalorder %s27_s0, 4   ;;  %s960_s23 = smov %s749_s24 }
 0x16d   : > { %s961_s24 = smov %s865_s9  ;;  %s962_s25 = smov %s757_s26 }
 0x16e   : > { %s963_s26 = smov %s965_s29  ;;  %26 = sbr.rel (!%p24_p12) target bundleno = 11 (0xb), region = 148 }
 0x173   :  { %393 = vsyncpa [#allocation7], 1 }
 0x174   :  { %395 = vsyncpa [#allocation7 + $0x1], 1 }
 0x175   :  { %396 = vsyncpa [#allocation8], 1 }
 0x176   :  { %398 = vsyncpa [#allocation8 + $0x1], 1 }
 0x177   :  { %399 = vsyncmov [#allocation3] }
 0x17a   :  { %s400_s6 = vpop.sfrf %399 }
 0x17b   :  { %p500_p4 = scmp.ne.s32.totalorder %s400_s6, 0 }
 0x17d   :  { %404 = shalt.err (%p500_p4)  }
 0x17e   :  { %406 = vsyncmov [#allocation3 + $0x1] }
 0x181   :  { %s407_s8 = vpop.sfrf %406 }
 0x182   :  { %p501_p8 = scmp.ne.s32.totalorder %s407_s8, 0 }
 0x184   :  { %411 = shalt.err (%p501_p8)  }

</bundles_post_ra>
